<compile_context>
chip_gen: v6e
topology: v6e:2x2x1
jax: 0.10.0
libtpu: 0.0.40
codegen_flags: <defaults>
</compile_context>

<pallas_src>
import functools

import jax
import jax.numpy as jnp
from jax.experimental import pallas as pl
from jax.experimental.pallas import tpu as pltpu

_NEG_BIG = -1e30  # finite "-inf": avoids inf-inf NaN paths in the online LSE.


# ----------------------------- logsumexp kernel -----------------------------

def _lse_kernel(logits_ref, lse_ref, m_ref, s_ref, *, n_cols, tile_vocab, ragged):
    """Online logsumexp over a (row-tile [parallel], vocab-chunk [arbitrary]) grid.

    Scratch is per row-tile state (reinitialized at chunk k == 0):
      m_ref: running max, s_ref: running sum(exp).
    The per-row LSE block is written once, at the last vocab chunk.
    """
    k = pl.program_id(1)

    @pl.when(k == 0)
    def _init():
        m_ref[...] = jnp.full_like(m_ref, _NEG_BIG)
        s_ref[...] = jnp.zeros_like(s_ref)

    x = logits_ref[...].astype(jnp.float32)                       # (TM, TV)

    if ragged:
        # Compiled out entirely when V % tv == 0.  When ragged, build a
        # (1, TV) additive bias from a tile-local iota vs. a shifted scalar
        # limit: the iota/compare/select touch only TV elements, and the
        # per-element cost on the (TM, TV) tile is a single broadcast add.
        limit = n_cols - k * tile_vocab                           # scalar
        col = jax.lax.broadcasted_iota(jnp.int32, (1, x.shape[1]), 1)
        x = x + jnp.where(col < limit, 0.0, _NEG_BIG).astype(jnp.float32)

    m_prev = m_ref[...]
    m_new = jnp.maximum(m_prev, jnp.max(x, axis=-1, keepdims=True))
    s_ref[...] = (s_ref[...] * jnp.exp(m_prev - m_new)
                  + jnp.sum(jnp.exp(x - m_new), axis=-1, keepdims=True))
    m_ref[...] = m_new

    @pl.when(k == pl.num_programs(1) - 1)
    def _finalize():
        lse = m_ref[...] + jnp.log(s_ref[...])                    # (TM, 1)
        # Lane-dense writeback: broadcast across the 128-lane minor dim so
        # stores are unmasked full-lane vst (a last-dim of 1 forces masked
        # vst.msk).  Output bytes remain negligible vs. the N*V read.
        lse_ref[...] = jnp.broadcast_to(lse, lse_ref.shape)


def _pick_tiles(n_rows, n_cols, itemsize, tile_rows, tile_vocab, block_cap_bytes):
    """Pick (row-tile, vocab-chunk) sizes."""
    if n_rows <= 16:
        tm = n_rows                                  # tiny problem: one block
    else:
        # 16-aligned row tiles keep bf16 (16,128) packing intact.
        tm = max(16, min(tile_rows, (n_rows // 16) * 16))
        # v7x megacore: the row axis is the "parallel" one; make sure there are
        # >= 4 row tiles to shard across the 2 TensorCores when N allows it.
        while pl.cdiv(n_rows, tm) < 4 and tm >= 128:
            tm //= 2
    # Vocab chunk: multiple of 128 (or all of V), with the block capped at
    # block_cap_bytes so a double-buffered pair fits default scoped VMEM.
    cap = max(128, ((block_cap_bytes // (tm * itemsize)) // 128) * 128)
    tv = min(tile_vocab, cap)
    if n_cols <= tv:
        tv = n_cols
    return tm, tv


def cross_entropy_mean(logits, target, *, tile_rows=256, tile_vocab=8192,
                       block_cap_bytes=4 << 20):
    """Mean NLL over rows. logits: [N, V] (f32 or bf16), target: [N] int.

    Matches torch.nn.CrossEntropyLoss() defaults (mean reduction, no weights).
    """
    N, V = logits.shape
    itemsize = jnp.dtype(logits.dtype).itemsize
    tm, tv = _pick_tiles(N, V, itemsize, tile_rows, tile_vocab, block_cap_bytes)
    grid = (pl.cdiv(N, tm), pl.cdiv(V, tv))
    ragged = (V % tv) != 0

    kernel = functools.partial(_lse_kernel, n_cols=V, tile_vocab=tv, ragged=ragged)
    lse = pl.pallas_call(
        kernel,
        out_shape=jax.ShapeDtypeStruct((N, 128), jnp.float32),
        grid_spec=pltpu.PrefetchScalarGridSpec(
            num_scalar_prefetch=0,
            grid=grid,
            in_specs=[
                # Streaming (row-tile, vocab-chunk) blocks, <= 4 MiB each, so the
                # double-buffered pair fits default scoped VMEM on v5e (16 MiB)
                # and v6e/v7x (32 MiB).  On v7x consider block_cap_bytes=8<<20
                # and/or pipeline_mode=pl.Buffered(3) here.
                pl.BlockSpec((tm, tv), lambda i, k: (i, k)),
            ],
            out_specs=pl.BlockSpec((tm, 128), lambda i, k: (i, 0)),
            scratch_shapes=[
                pltpu.VMEM((tm, 1), jnp.float32),   # running max
                pltpu.VMEM((tm, 1), jnp.float32),   # running sum(exp)
            ],
        ),
        compiler_params=pltpu.CompilerParams(
            # Row tiles are independent -> shard across TensorCores (v7x megacore).
            # Vocab axis is an in-VMEM reduction -> arbitrary, innermost.
            dimension_semantics=("parallel", "arbitrary")),
        cost_estimate=pl.CostEstimate(
            flops=4 * N * V,
            transcendentals=N * V,
            bytes_accessed=N * V * itemsize + N * 128 * 4),
    )(logits)

    lse = lse[:, 0]                                               # (N,)
    tgt = target.reshape(N).astype(jnp.int32)
    # Target-logit extraction lives outside the streaming kernel (an XLA gather
    # of N values) so the kernel's per-element VPU work stays minimal.
    tgt_logit = jnp.take_along_axis(
        logits, tgt[:, None], axis=-1)[:, 0].astype(jnp.float32)
    # TODO(synk): ignore_index=-100 targets would need a validity mask here.
    return jnp.mean(lse - tgt_logit)


# ------------------------------ Triplet loss (JAX) -------------------------------

def triplet_loss_mean(anchor, positive, negative, margin=1.0, eps=1e-6):
    """torch.nn.TripletMarginLoss semantics (p=2, eps added to diff, mean).

    Plain JAX on purpose: only 3*B*D elements — a pallas_call launch would cost
    more than the compute itself.
    """
    a = anchor.astype(jnp.float32)
    p = positive.astype(jnp.float32)
    n = negative.astype(jnp.float32)
    d_ap = jnp.sqrt(jnp.sum((a - p + eps) ** 2, axis=-1))
    d_an = jnp.sqrt(jnp.sum((a - n + eps) ** 2, axis=-1))
    return jnp.mean(jnp.maximum(d_ap - d_an + margin, 0.0))


# --------------------------------- SiameseLoss ------------------------------------

def siamese_loss(outp, target, lam=0.7, margin=1.0):
    logits, reps = outp
    B, S, V = logits.shape
    ce_loss = cross_entropy_mean(logits.reshape(B * S, V), target.reshape(B * S))
    trip = triplet_loss_mean(*reps, margin=margin)
    return (1.0 - lam) * ce_loss + lam * trip


if __name__ == "__main__":
    # Small shapes consistent with the forward pass (real vocab_size=250002 shrunk).
    B, S, V, D = 2, 8, 512, 32

    key = jax.random.PRNGKey(0)
    k_logits, k_tgt, k_a, k_p, k_n = jax.random.split(key, 5)

    logits = jax.random.normal(k_logits, (B, S, V), dtype=jnp.float32)
    target = jax.random.randint(k_tgt, (B, S), 0, V, dtype=jnp.int32)
    anchor = jax.random.normal(k_a, (B, D), dtype=jnp.float32)
    positive = jax.random.normal(k_p, (B, D), dtype=jnp.float32)
    negative = jax.random.normal(k_n, (B, D), dtype=jnp.float32)

    loss_fn = jax.jit(functools.partial(siamese_loss, lam=0.7, margin=1.0))
    loss = loss_fn((logits, (anchor, positive, negative)), target)
    loss = jax.block_until_ready(loss)

    # Lightweight pure-JAX sanity check of the Pallas result.
    x = logits.reshape(-1, V)
    lse_ref = jax.nn.logsumexp(x, axis=-1)
    ce_ref = jnp.mean(lse_ref - x[jnp.arange(B * S), target.reshape(-1)])
    d_ap = jnp.linalg.norm(anchor - positive + 1e-6, axis=-1)
    d_an = jnp.linalg.norm(anchor - negative + 1e-6, axis=-1)
    trip_ref = jnp.mean(jnp.maximum(d_ap - d_an + 1.0, 0.0))
    ref = 0.3 * ce_ref + 0.7 * trip_ref
    assert jnp.allclose(loss, ref, rtol=1e-5, atol=1e-5), (loss, ref)

    print("KERNEL_OK")
</pallas_src>

<mosaic_0001>
module attributes {stable_mosaic.version = 11 : i64} {
  func.func @_lse_kernel(%arg0: i32, %arg1: i32, %arg2: memref<16x512xf32, #tpu.memory_space<vmem>>, %arg3: memref<16x128xf32, #tpu.memory_space<vmem>>, %arg4: memref<16x1xf32, #tpu.memory_space<vmem>>, %arg5: memref<16x1xf32, #tpu.memory_space<vmem>>) attributes {dimension_semantics = [#tpu.dimension_semantics<parallel>, #tpu.dimension_semantics<arbitrary>], iteration_bounds = array<i64: 1, 1>, scalar_prefetch = 0 : i64, scratch_operands = 2 : i64, tpu.core_type = #tpu.core_type<tc>, window_params = [{transform_indices = @transform_0, window_bounds = array<i64: 16, 512>}, {transform_indices = @transform_1, window_bounds = array<i64: 16, 128>}]} {
    %c0_i32 = arith.constant 0 : i32
    %0 = arith.cmpi eq, %arg1, %c0_i32 : i32
    %1 = arith.extui %0 : i1 to i32
    %c0_i32_0 = arith.constant 0 : i32
    %2 = arith.cmpi ne, %1, %c0_i32_0 : i32
    scf.if %2 {
      %cst_13 = arith.constant -1.000000e+30 : f32
      %23 = vector.broadcast %cst_13 : f32 to vector<16x1xf32>
      %c0_14 = arith.constant 0 : index
      %c0_15 = arith.constant 0 : index
      %24 = vector.load %arg4[%c0_14, %c0_15] : memref<16x1xf32, #tpu.memory_space<vmem>>, vector<16x1xf32>
      tpu.vector_store %arg4[%c0_14, %c0_15], %23 {strides = array<i32>} : memref<16x1xf32, #tpu.memory_space<vmem>>, vector<16x1xf32>,
      %cst_16 = arith.constant 0.000000e+00 : f32
      %25 = vector.broadcast %cst_16 : f32 to vector<16x1xf32>
      %c0_17 = arith.constant 0 : index
      %c0_18 = arith.constant 0 : index
      %26 = vector.load %arg5[%c0_17, %c0_18] : memref<16x1xf32, #tpu.memory_space<vmem>>, vector<16x1xf32>
      tpu.vector_store %arg5[%c0_17, %c0_18], %25 {strides = array<i32>} : memref<16x1xf32, #tpu.memory_space<vmem>>, vector<16x1xf32>,
    } else {
    }
    %c0 = arith.constant 0 : index
    %c0_1 = arith.constant 0 : index
    %3 = vector.load %arg2[%c0, %c0_1] : memref<16x512xf32, #tpu.memory_space<vmem>>, vector<16x512xf32>
    %c0_2 = arith.constant 0 : index
    %c0_3 = arith.constant 0 : index
    %4 = vector.load %arg4[%c0_2, %c0_3] : memref<16x1xf32, #tpu.memory_space<vmem>>, vector<16x1xf32>
    %cst = arith.constant dense<0xFF800000> : vector<16xf32>
    %5 = vector.multi_reduction <maximumf>, %3, %cst [1] : vector<16x512xf32> to vector<16xf32>
    %6 = vector.shape_cast %5 : vector<16xf32> to vector<16x1xf32>
    %7 = arith.maximumf %4, %6 : vector<16x1xf32>
    %c0_4 = arith.constant 0 : index
    %c0_5 = arith.constant 0 : index
    %8 = vector.load %arg5[%c0_4, %c0_5] : memref<16x1xf32, #tpu.memory_space<vmem>>, vector<16x1xf32>
    %9 = arith.subf %4, %7 : vector<16x1xf32>
    %10 = math.exp %9 : vector<16x1xf32>
    %11 = arith.mulf %8, %10 : vector<16x1xf32>
    %12 = vector.broadcast %7 : vector<16x1xf32> to vector<16x512xf32>
    %13 = arith.subf %3, %12 : vector<16x512xf32>
    %14 = math.exp %13 : vector<16x512xf32>
    %cst_6 = arith.constant dense<0.000000e+00> : vector<16xf32>
    %15 = vector.multi_reduction <add>, %14, %cst_6 [1] : vector<16x512xf32> to vector<16xf32>
    %16 = vector.shape_cast %15 : vector<16xf32> to vector<16x1xf32>
    %17 = arith.addf %11, %16 : vector<16x1xf32>
    %c0_7 = arith.constant 0 : index
    %c0_8 = arith.constant 0 : index
    %18 = vector.load %arg5[%c0_7, %c0_8] : memref<16x1xf32, #tpu.memory_space<vmem>>, vector<16x1xf32>
    tpu.vector_store %arg5[%c0_7, %c0_8], %17 {strides = array<i32>} : memref<16x1xf32, #tpu.memory_space<vmem>>, vector<16x1xf32>,
    %c0_9 = arith.constant 0 : index
    %c0_10 = arith.constant 0 : index
    %19 = vector.load %arg4[%c0_9, %c0_10] : memref<16x1xf32, #tpu.memory_space<vmem>>, vector<16x1xf32>
    tpu.vector_store %arg4[%c0_9, %c0_10], %7 {strides = array<i32>} : memref<16x1xf32, #tpu.memory_space<vmem>>, vector<16x1xf32>,
    %c0_i32_11 = arith.constant 0 : i32
    %20 = arith.cmpi eq, %arg1, %c0_i32_11 : i32
    %21 = arith.extui %20 : i1 to i32
    %c0_i32_12 = arith.constant 0 : i32
    %22 = arith.cmpi ne, %21, %c0_i32_12 : i32
    scf.if %22 {
      %c0_13 = arith.constant 0 : index
      %c0_14 = arith.constant 0 : index
      %23 = vector.load %arg4[%c0_13, %c0_14] : memref<16x1xf32, #tpu.memory_space<vmem>>, vector<16x1xf32>
      %c0_15 = arith.constant 0 : index
      %c0_16 = arith.constant 0 : index
      %24 = vector.load %arg5[%c0_15, %c0_16] : memref<16x1xf32, #tpu.memory_space<vmem>>, vector<16x1xf32>
      %25 = math.log %24 : vector<16x1xf32>
      %26 = arith.addf %23, %25 : vector<16x1xf32>
      %27 = vector.shape_cast %26 : vector<16x1xf32> to vector<16x1xf32>
      %28 = vector.broadcast %27 : vector<16x1xf32> to vector<16x128xf32>
      %c0_17 = arith.constant 0 : index
      %c0_18 = arith.constant 0 : index
      %29 = vector.load %arg3[%c0_17, %c0_18] : memref<16x128xf32, #tpu.memory_space<vmem>>, vector<16x128xf32>
      tpu.vector_store %arg3[%c0_17, %c0_18], %28 {strides = array<i32>} : memref<16x128xf32, #tpu.memory_space<vmem>>, vector<16x128xf32>,
    } else {
    }
    return
  }
  func.func @transform_0(%arg0: i32, %arg1: i32) -> (i32, i32) {
    %c0_i32 = arith.constant 0 : i32
    return %arg0, %arg1 : i32, i32
  }
  func.func @transform_1(%arg0: i32, %arg1: i32) -> (i32, i32) {
    %c0_i32 = arith.constant 0 : i32
    %c0_i32_0 = arith.constant 0 : i32
    return %arg0, %c0_i32 : i32, i32
  }
}

</mosaic_0001>

<bundles_post_ra>
// kernel: siamese_loss.1
= control target key start
LH: loop header
LB: loop body
LE: loop exit
PB: predicated region body
PF: predicated region fallthrough
CT: control target
= control target key end

     0   :  { %6 = vsyncpa [#allocation5], 0  ;;  %s198_s6 = smov [#allocation4]   ;;  %s231_s0 = inlined_call_operand.hbm [shape: f32[16,512], index: 0, kind: input, shape index: {}]   ;;  %s232_s1 = inlined_call_operand.vmem [shape: f32[16,128], index: 1, kind: output, shape index: {}]  }
   0x1   :  { %s12_s7 = sshll.u32 %s198_s6, 4  ;;  %s13_s7 = int_to_ptr.vmem [resolvable:$true] %s12_s7 }
   0x2   :  { %s184_s8 = scalar_lea.vmem %s13_s7, 1024  ;;  %p189_p1 = scmp.lt.s32.totalorder %s13_s7, %s13_s7 }
   0x3   :  { %p185_p0 = scmp.ne.s32.totalorder %s13_s7, %s184_s8  ;;  %p190_p2 = scmp.lt.s32.totalorder %s184_s8, %s184_s8 }
   0x5   :  { %p191_p3 = por %p190_p2, %p189_p1 }
   0x7   :  { %p192_p4 = pnand %p191_p3, %p185_p0 }
   0x9   :  { %195 = shalt.err (!%p192_p4)
}
   0xa   :  { %s199_s9 = smov 512   ;;  %s200_s10 = smov 32  }
   0xb   :  { %18 = dma.hbm_to_vmem [thread:$0]  %s231_s0, 1024, %s13_s7, [#allocation5], %s199_s9, %s199_s9, %s200_s10  }
   0xc   :  { %196 = dma.done.wait [#allocation5], 1024  }
   0xd   :  { %197 = vsyncadd [#allocation5], 4294966272  ;;  %vm26_vm0 = vcmask 7168   ;;  %v201_v0 = vmov -1e+30   ;;  %v31_v1 = vld [vmem:[#allocation4] sm:$0xff] }
   0xe   :  { %27 = vst.msk [vmem:[#allocation2] sm:$0xff] %vm26_vm0, %v201_v0  ;;  %28 = vst.msk [vmem:[#allocation2 + $0x8] sm:$0xff] %vm26_vm0, %v201_v0  ;;  %v32_v2 = vld [vmem:[#allocation4 + $0x8] sm:$0xff]  ;;  %v33_v3 = vld [vmem:[#allocation4 + $0x10] sm:$0xff]  ;;  %v202_v15 = vmov 0   ;;  %v203_v16 = vmov 0.0  }
   0xf   :  { %v34_v4 = vld [vmem:[#allocation4 + $0x18] sm:$0xff]  ;;  %v41_v5 = vmax.f32 %v31_v1, %v33_v3  ;;  %v35_v6 = vld [vmem:[#allocation4 + $0x20] sm:$0xff]  ;;  %v36_v7 = vld [vmem:[#allocation4 + $0x28] sm:$0xff]  ;;  %150 = vset.pattern.permute.xlu1 %v202_v15  ;;  %151 = vset.pattern.permute.xlu0 %v202_v15  ;;  %29 = vst.msk [vmem:[#allocation3] sm:$0xff] %vm26_vm0, %v203_v16 }
  0x10   :  { %v42_v8 = vmax.f32 %v32_v2, %v34_v4  ;;  %v37_v9 = vld [vmem:[#allocation4 + $0x30] sm:$0xff]  ;;  %v38_v10 = vld [vmem:[#allocation4 + $0x38] sm:$0xff]  ;;  %30 = vst.msk [vmem:[#allocation3 + $0x8] sm:$0xff] %vm26_vm0, %v203_v16 }
  0x11   :  { %v46_v11 = vmax.f32 %v35_v6, %v37_v9  ;;  %v47_v12 = vmax.f32 %v36_v7, %v38_v10 }
  0x12   :  { %v43_v13 = vmax.f32 %v41_v5, %v42_v8 }
  0x13   :  { %v48_v14 = vmax.f32 %v46_v11, %v47_v12 }
  0x14   :  { %44 = vmax.xlane.f32.xlu0 %v43_v13 }
  0x15   :  { %v39_v17 = vld [vmem:[#allocation2] sm:$0xff]  ;;  %v40_v20 = vld [vmem:[#allocation2 + $0x8] sm:$0xff] }
  0x16   :  { %v53_v60 = vld [vmem:[#allocation3] sm:$0xff] }
  0x17   :  { %v54_v0 = vld [vmem:[#allocation3 + $0x8] sm:$0xff] }
  0x18   :  { %49 = vmax.xlane.f32.xlu0 %v48_v14 }
  0x9d   :  { %v45_v18 = vpop.xlane.xlu0 %44 }
  0x9e   :  { %v51_v19 = vmax.f32 %v39_v17, %v45_v18 }
  0xa0   :  { %v55_v21 = vsub.f32 %v39_v17, %v51_v19  ;;  %112 = vst.msk [vmem:[#allocation2] sm:$0xff] %vm26_vm0, %v51_v19  ;;  %65 = vperm.xlu1 %150, %v51_v19  }
  0xa1   :  { %v50_v22 = vpop.xlane.xlu0 %49 }
  0xa2   :  { %v52_v23 = vmax.f32 %v40_v20, %v50_v22  ;;  %v57_v57 = vmul.f32 1.442695, %v55_v21 }
  0xa4   :  { %v56_v24 = vsub.f32 %v40_v20, %v52_v23  ;;  %113 = vst.msk [vmem:[#allocation2 + $0x8] sm:$0xff] %vm26_vm0, %v52_v23  ;;  %70 = vperm.xlu1 %150, %v52_v23  }
  0xa6   :  { %v59_v58 = vmul.f32 1.442695, %v56_v24 }
  0xab   :  { %v118_v13 = vld [vmem:[#allocation2 + $0x8] sm:$0xff] }
 0x11b   :  { %v66_v25 = vpop.permute.xlu1 %65 }
 0x11c   :  { %v73_v26 = vsub.f32 %v31_v1, %v66_v25  ;;  %v74_v27 = vsub.f32 %v32_v2, %v66_v25  ;;  %v75_v28 = vsub.f32 %v33_v3, %v66_v25  ;;  %v76_v29 = vsub.f32 %v34_v4, %v66_v25 }
 0x11e   :  { %v81_v30 = vmul.f32 1.442695, %v73_v26  ;;  %v83_v31 = vmul.f32 1.442695, %v74_v27  ;;  %v85_v32 = vmul.f32 1.442695, %v75_v28 }
 0x11f   :  { %v87_v33 = vmul.f32 1.442695, %v76_v29  ;;  %v71_v34 = vpop.permute.xlu1 %70 }
 0x120   :  { %152 = vpow2.f32 %v81_v30  ;;  %v77_v35 = vsub.f32 %v35_v6, %v71_v34  ;;  %v78_v36 = vsub.f32 %v36_v7, %v71_v34  ;;  %v79_v37 = vsub.f32 %v37_v9, %v71_v34  ;;  %v117_v9 = vld [vmem:[#allocation2] sm:$0xff] }
 0x121   :  { %154 = vpow2.f32 %v83_v31  ;;  %v80_v38 = vsub.f32 %v38_v10, %v71_v34 }
 0x122   :  { %156 = vpow2.f32 %v85_v32  ;;  %v89_v39 = vmul.f32 1.442695, %v77_v35  ;;  %v91_v40 = vmul.f32 1.442695, %v78_v36  ;;  %v93_v41 = vmul.f32 1.442695, %v79_v37 }
 0x123   :  { %158 = vpow2.f32 %v87_v33  ;;  %v95_v42 = vmul.f32 1.442695, %v80_v38 }
 0x124   :  { %160 = vpow2.f32 %v89_v39 }
 0x125   :  { %162 = vpow2.f32 %v91_v40 }
 0x126   :  { %164 = vpow2.f32 %v93_v41 }
 0x127   :  { %166 = vpow2.f32 %v95_v42 }
 0x128   :  { %168 = vpow2.f32 %v57_v57 }
 0x129   :  { %170 = vpow2.f32 %v59_v58 }
 0x12d   :  { %v153_v43 = vpop.eup %152 }
 0x12e   :  { %v155_v44 = vpop.eup %154 }
 0x12f   :  { %v157_v45 = vpop.eup %156  ;;  %v97_v46 = vadd.f32 %v155_v44, %v153_v43 }
 0x130   :  { %v159_v47 = vpop.eup %158 }
 0x131   :  { %v161_v48 = vpop.eup %160  ;;  %v98_v49 = vadd.f32 %v157_v45, %v97_v46 }
 0x132   :  { %v163_v50 = vpop.eup %162 }
 0x133   :  { %v99_v51 = vadd.f32 %v159_v47, %v98_v49  ;;  %v102_v52 = vadd.f32 %v163_v50, %v161_v48  ;;  %v165_v53 = vpop.eup %164 }
 0x134   :  { %v167_v55 = vpop.eup %166 }
 0x135   :  { %100 = vadd.xlane.f32.xlu0 %v99_v51  ;;  %v103_v54 = vadd.f32 %v165_v53, %v102_v52  ;;  %v169_v59 = vpop.eup %168 }
 0x136   :  { %v61_v61 = vmul.f32 %v169_v59, %v53_v60  ;;  %v171_v62 = vpop.eup %170 }
 0x137   :  { %v104_v56 = vadd.f32 %v167_v55, %v103_v54  ;;  %v62_v2 = vmul.f32 %v171_v62, %v54_v0 }
 0x139   :  { %105 = vadd.xlane.f32.xlu1 %v104_v56 }
 0x1be   :  { %v101_v63 = vpop.xlane.xlu0 %100 }
 0x1bf   :  { %v107_v1 = vadd.f32 %v101_v63, %v61_v61 }
 0x1c1   :  { %110 = vst.msk [vmem:[#allocation3] sm:$0xff] %vm26_vm0, %v107_v1 }
 0x1c2   :  { %v106_v3 = vpop.xlane.xlu1 %105 }
 0x1c3   :  { %v108_v4 = vadd.f32 %v106_v3, %v62_v2 }
 0x1c5   :  { %111 = vst.msk [vmem:[#allocation3 + $0x8] sm:$0xff] %vm26_vm0, %v108_v4 }
 0x1c8   :  { %v119_v5 = vld [vmem:[#allocation3] sm:$0xff] }
 0x1c9   :  { %172 = vlog2.f32 %v119_v5 }
 0x1cc   :  { %v120_v6 = vld [vmem:[#allocation3 + $0x8] sm:$0xff] }
 0x1cd   :  { %174 = vlog2.f32 %v120_v6 }
 0x1d6   :  { %v173_v7 = vpop.eup %172 }
 0x1d7   :  { %v122_v8 = vmul.f32 0.6931472, %v173_v7 }
 0x1d9   :  { %v125_v10 = vadd.f32 %v122_v8, %v117_v9 }
 0x1da   :  { %v175_v11 = vpop.eup %174 }
 0x1db   :  { %129 = vperm.xlu0 %151, %v125_v10   ;;  %v124_v12 = vmul.f32 0.6931472, %v175_v11 }
 0x1dd   :  { %v126_v14 = vadd.f32 %v124_v12, %v118_v13 }
 0x1df   :  { %134 = vperm.xlu1 %150, %v126_v14  }
 0x256   :  { %v130_v15 = vpop.permute.xlu0 %129 }
 0x257   :  { %137 = vst [vmem:[%s232_s1] sm:$0xff] %v130_v15 }
 0x25a   :  { %v135_v16 = vpop.permute.xlu1 %134 }
 0x25b   :  { %138 = vst [vmem:[%s232_s1 + $0x8] sm:$0xff] %v135_v16 }
 0x25c   :  { %143 = vsyncpa [#allocation5], 1 }

</bundles_post_ra>
